<compile_context>
chip_gen: v7x
topology: tpu7x:2x2x1
jax: 0.10.0
libtpu: 0.0.40
codegen_flags: <defaults>
</compile_context>

<pallas_src>
import math

import jax
import jax.numpy as jnp
from jax.experimental import pallas as pl
from jax.experimental.pallas import tpu as pltpu


def _cdiv(a, b):
    return -(-a // b)


def _round_up(x, m):
    return _cdiv(x, m) * m


def weight_fusion_kernel(w_ref, x_ref, b_ref, o_ref):
    # w_ref: SMEM (V,)   f32      -- per-view scalar weights
    # x_ref: VMEM (V, tr, W)      -- stacked view features (current row tile)
    # b_ref: VMEM (1, W)          -- bias tiled to the kernel lane width W
    # o_ref: VMEM (tr, W)
    V = x_ref.shape[0]
    acc = x_ref[0].astype(jnp.float32) * w_ref[0]
    for i in range(1, V):  # V is tiny & static -> fully unrolled VPU FMAs
        acc = acc + x_ref[i].astype(jnp.float32) * w_ref[i]
    o_ref[...] = (acc + b_ref[...].astype(jnp.float32)).astype(o_ref.dtype)


def weight_fusion(inputs, weight, bias=None, *, tile_rows=None):
    """inputs: (V, N, D); weight: (1, 1, V) (or (V,)); bias: (D,) or None.

    Returns (N, D) == sum_v inputs[v] * weight[0, 0, v] + bias.
    """
    V, N, D = inputs.shape
    dtype = inputs.dtype
    itemsize = jnp.dtype(dtype).itemsize

    w_flat = jnp.asarray(weight).reshape(V).astype(jnp.float32)
    if bias is None:
        bias_arr = jnp.zeros((D,), dtype=dtype)
    else:
        bias_arr = jnp.asarray(bias).reshape(D)

    # --- lane-dense regrouping (free reshape) whenever divisibility allows.
    g = 128 // math.gcd(D, 128)
    if N % g == 0:
        rows, Wk = N // g, g * D
        x = inputs.reshape(V, rows, Wk)            # contiguous -> no copy
        b_tile = jnp.tile(bias_arr, g).reshape(1, Wk)
    else:
        # Ragged N: keep the original layout.  Lane width D may be < 128
        # (masked stores), but that sits well under the HBM roofline and we
        # avoid copying the whole input just to pad it.
        rows, Wk = N, D
        x = inputs
        b_tile = bias_arr.reshape(1, D)

    # --- tile sizing.
    # Sub-32-bit dtypes pack along sublanes -> keep row tiles native-aligned.
    row_align = 8 * max(1, 4 // itemsize)          # f32: 8, bf16: 16, int8: 32
    rows_aligned = _round_up(max(rows, 1), row_align)

    # Double-buffered input (2*V blocks) + double-buffered output (2 blocks),
    # lanes padded to 128 in VMEM.  Keep within ~20 MiB of the 32 MiB scoped
    # VMEM that is safe on v5e / v6e / v7x.
    vmem_budget = 20 * 1024 * 1024
    lane_padded = _round_up(Wk, 128)
    per_row_bytes = (2 * V + 2) * lane_padded * itemsize
    tr_vmem = max(row_align, (vmem_budget // per_row_bytes) // row_align * row_align)
    # TODO(synk): add a second (lane) grid axis if even an 8-row block exceeds
    # the VMEM budget (pathologically large feat_dim).

    if tile_rows is None:
        # Biggest VMEM-friendly tile, but keep >= ~4 grid steps so the DMA
        # pipeline overlaps and v7x can shard the grid over both TensorCores.
        tile_rows = min(tr_vmem, max(row_align, _round_up(_cdiv(rows, 4), row_align)))
    tile_rows = max(row_align, (int(tile_rows) // row_align) * row_align)
    tile_rows = min(tile_rows, rows_aligned)

    grid = (_cdiv(rows, tile_rows),)   # partial last block handled by Pallas

    out = pl.pallas_call(
        weight_fusion_kernel,
        out_shape=jax.ShapeDtypeStruct((rows, Wk), dtype),
        grid_spec=pltpu.PrefetchScalarGridSpec(
            num_scalar_prefetch=0,
            grid=grid,
            in_specs=[
                pl.BlockSpec(memory_space=pltpu.SMEM),                  # weights (V,)
                pl.BlockSpec((V, tile_rows, Wk), lambda i: (0, i, 0)),  # input tile
                pl.BlockSpec((1, Wk), lambda i: (0, 0)),                # bias tile
            ],
            out_specs=pl.BlockSpec((tile_rows, Wk), lambda i: (i, 0)),
        ),
        compiler_params=pltpu.CompilerParams(
            dimension_semantics=("parallel",),     # v7x: shard grid over 2 TCs
            vmem_limit_bytes=32 * 1024 * 1024,     # explicit, safe on v5e/v6e/v7x
        ),
    )(w_flat, x, b_tile)

    # Free reshape back to (N, D) (rows * Wk == N * D); no slicing needed since
    # nothing was padded.
    return out.reshape(N, D)


def init_params(key, feat_views, feat_dim, dtype=jnp.float32):
    # Mirrors torch kaiming_uniform_(a=sqrt(5)) on shape (1,1,V):
    #   fan_in = V, gain = sqrt(2/(1+5)) = 1/sqrt(3),
    #   bound = gain*sqrt(3/fan_in) = 1/sqrt(V)
    # bias: uniform(-1/sqrt(fan_in), 1/sqrt(fan_in))
    kw, kb = jax.random.split(key)
    bound = 1.0 / math.sqrt(feat_views)
    weight = jax.random.uniform(
        kw, (1, 1, feat_views), dtype=dtype, minval=-bound, maxval=bound
    )
    bias = jax.random.uniform(
        kb, (feat_dim,), dtype=dtype, minval=-bound, maxval=bound
    )
    return weight, bias


if __name__ == "__main__":
    key = jax.random.PRNGKey(0)

    def run_case(V, N, D, tile_rows=None, use_bias=True):
        k_in, k_par = jax.random.split(jax.random.fold_in(key, V * 1000 + N * 10 + D))
        x = jax.random.normal(k_in, (V, N, D), dtype=jnp.float32)
        weight, bias = init_params(k_par, V, D)
        b = bias if use_bias else None
        out = jax.block_until_ready(weight_fusion(x, weight, b, tile_rows=tile_rows))
        ref = jnp.einsum("vnd,v->nd", x, weight.reshape(V))
        if use_bias:
            ref = ref + bias
        assert out.shape == (N, D), (out.shape, (N, D))
        assert jnp.allclose(out, ref, atol=1e-5, rtol=1e-5), (V, N, D)

    # 1) D < 128, N % g == 0 -> lane-dense (W=128) path, ragged last row-tile.
    run_case(4, 100, 32)
    # 2) explicit small tile -> multi-step pipelined grid on the same path.
    run_case(4, 100, 32, tile_rows=8)
    # 3) N % g != 0 -> direct narrow-lane path (no wrapper pad / copy).
    run_case(3, 37, 48)
    # 4) D a multiple of 128, no bias.
    run_case(2, 64, 128, use_bias=False)

    print("KERNEL_OK")
</pallas_src>

<mosaic_0001>
module attributes {stable_mosaic.version = 11 : i64} {
  func.func @weight_fusion_kernel(%arg0: i32, %arg1: memref<4xf32, #tpu.memory_space<smem>>, %arg2: memref<4x8x128xf32, #tpu.memory_space<vmem>>, %arg3: memref<1x128xf32, #tpu.memory_space<vmem>>, %arg4: memref<8x128xf32, #tpu.memory_space<vmem>>) attributes {dimension_semantics = [#tpu.dimension_semantics<parallel>], iteration_bounds = array<i64: 4>, scalar_prefetch = 0 : i64, scratch_operands = 0 : i64, tpu.core_type = #tpu.core_type<tc>, window_params = [{transform_indices = @transform_0, window_bounds = array<i64: 4>}, {transform_indices = @transform_1, window_bounds = array<i64: 4, 8, 128>}, {pipeline_mode = #tpu.pipeline_mode<synchronous>, transform_indices = @transform_2, window_bounds = array<i64: 1, 128>}, {transform_indices = @transform_3, window_bounds = array<i64: 8, 128>}]} {
    %c0 = arith.constant 0 : index
    %c0_0 = arith.constant 0 : index
    %c0_1 = arith.constant 0 : index
    %0 = vector.load %arg2[%c0, %c0_0, %c0_1] : memref<4x8x128xf32, #tpu.memory_space<vmem>>, vector<1x8x128xf32>
    %1 = vector.shape_cast %0 : vector<1x8x128xf32> to vector<8x128xf32>
    %c0_2 = arith.constant 0 : index
    %2 = memref.load %arg1[%c0_2] : memref<4xf32, #tpu.memory_space<smem>>
    %3 = vector.broadcast %2 : f32 to vector<8x128xf32>
    %4 = arith.mulf %1, %3 : vector<8x128xf32>
    %c1 = arith.constant 1 : index
    %c0_3 = arith.constant 0 : index
    %c0_4 = arith.constant 0 : index
    %5 = vector.load %arg2[%c1, %c0_3, %c0_4] : memref<4x8x128xf32, #tpu.memory_space<vmem>>, vector<1x8x128xf32>
    %6 = vector.shape_cast %5 : vector<1x8x128xf32> to vector<8x128xf32>
    %c1_5 = arith.constant 1 : index
    %7 = memref.load %arg1[%c1_5] : memref<4xf32, #tpu.memory_space<smem>>
    %8 = vector.broadcast %7 : f32 to vector<8x128xf32>
    %9 = arith.mulf %6, %8 : vector<8x128xf32>
    %10 = arith.addf %4, %9 : vector<8x128xf32>
    %c2 = arith.constant 2 : index
    %c0_6 = arith.constant 0 : index
    %c0_7 = arith.constant 0 : index
    %11 = vector.load %arg2[%c2, %c0_6, %c0_7] : memref<4x8x128xf32, #tpu.memory_space<vmem>>, vector<1x8x128xf32>
    %12 = vector.shape_cast %11 : vector<1x8x128xf32> to vector<8x128xf32>
    %c2_8 = arith.constant 2 : index
    %13 = memref.load %arg1[%c2_8] : memref<4xf32, #tpu.memory_space<smem>>
    %14 = vector.broadcast %13 : f32 to vector<8x128xf32>
    %15 = arith.mulf %12, %14 : vector<8x128xf32>
    %16 = arith.addf %10, %15 : vector<8x128xf32>
    %c3 = arith.constant 3 : index
    %c0_9 = arith.constant 0 : index
    %c0_10 = arith.constant 0 : index
    %17 = vector.load %arg2[%c3, %c0_9, %c0_10] : memref<4x8x128xf32, #tpu.memory_space<vmem>>, vector<1x8x128xf32>
    %18 = vector.shape_cast %17 : vector<1x8x128xf32> to vector<8x128xf32>
    %c3_11 = arith.constant 3 : index
    %19 = memref.load %arg1[%c3_11] : memref<4xf32, #tpu.memory_space<smem>>
    %20 = vector.broadcast %19 : f32 to vector<8x128xf32>
    %21 = arith.mulf %18, %20 : vector<8x128xf32>
    %22 = arith.addf %16, %21 : vector<8x128xf32>
    %c0_12 = arith.constant 0 : index
    %c0_13 = arith.constant 0 : index
    %23 = vector.load %arg3[%c0_12, %c0_13] : memref<1x128xf32, #tpu.memory_space<vmem>>, vector<1x128xf32>
    %24 = vector.broadcast %23 : vector<1x128xf32> to vector<8x128xf32>
    %25 = arith.addf %22, %24 : vector<8x128xf32>
    %c0_14 = arith.constant 0 : index
    %c0_15 = arith.constant 0 : index
    %26 = vector.load %arg4[%c0_14, %c0_15] : memref<8x128xf32, #tpu.memory_space<vmem>>, vector<8x128xf32>
    tpu.vector_store %arg4[%c0_14, %c0_15], %25 {strides = array<i32>} : memref<8x128xf32, #tpu.memory_space<vmem>>, vector<8x128xf32>,
    return
  }
  func.func @transform_0(%arg0: i32) -> i32 {
    %c0_i32 = arith.constant 0 : i32
    %c0_i32_0 = arith.constant 0 : i32
    return %c0_i32 : i32
  }
  func.func @transform_1(%arg0: i32) -> (i32, i32, i32) {
    %c0_i32 = arith.constant 0 : i32
    %c0_i32_0 = arith.constant 0 : i32
    %c0_i32_1 = arith.constant 0 : i32
    return %c0_i32, %arg0, %c0_i32_0 : i32, i32, i32
  }
  func.func @transform_2(%arg0: i32) -> (i32, i32) {
    %c0_i32 = arith.constant 0 : i32
    %c0_i32_0 = arith.constant 0 : i32
    %c0_i32_1 = arith.constant 0 : i32
    return %c0_i32, %c0_i32_0 : i32, i32
  }
  func.func @transform_3(%arg0: i32) -> (i32, i32) {
    %c0_i32 = arith.constant 0 : i32
    %c0_i32_0 = arith.constant 0 : i32
    return %arg0, %c0_i32 : i32, i32
  }
}

</mosaic_0001>

<bundles_post_ra>
// kernel: tpu_custom_call.1
= control target key start
LH: loop header
LB: loop body
LE: loop exit
PB: predicated region body
PF: predicated region fallthrough
CT: control target
= control target key end

     0   :  { %8 = vsyncpa [#allocation4], 0  ;;  %s661_s0 = inlined_call_operand.vmem [shape: f32[4], index: 0, kind: input, shape index: {}]   ;;  %s662_s1 = inlined_call_operand.vmem [shape: f32[4,25,128], index: 1, kind: input, shape index: {}]   ;;  %s663_s2 = inlined_call_operand.vmem [shape: f32[1,128], index: 2, kind: input, shape index: {}]   ;;  %s664_s3 = inlined_call_operand.hbm [shape: f32[25,128], index: 3, kind: output, shape index: {}]  }
   0x1   :  { %9 = vsyncpa [#allocation3], 0 }
   0x2   :  { %11 = vsyncpa [#allocation3 + $0x1], 0  ;;  %s527_s12 = smov 0   ;;  %s529_s13 = smov 0  }
   0x3   :  { %s531_s14 = smov 0   ;;  %s533_s15 = smov 0  }
   0x4 LB: > { %s548_s16 = sadd.s32 4294967295, %s503_s15   ;;  %s351_s17 = sadd.s32 4294967294, %s503_s15   ;;  %s503_s15 = sphi %s533_s15, %s675_s15   ;;  %s499_s14 = sphi %s531_s14, %s674_s14   ;;  %s495_s13 = sphi %s529_s13, %s673_s13   ;;  %s491_s12 = sphi %s527_s12, %s672_s12  }
   0x5   : > { %s552_s18 = sadd.s32 1, %s503_s15   ;;  %s45_s19 = sadd.s32 1, %s499_s14 }
   0x6   : > { %s42_s20 = ssub.s32 %s503_s15, %s552_s18  ;;  %p52_p0 = scmp.ne.s32.totalorder %s499_s14, %s495_s13 }
   0x7   : > { %p43_p1 = scmp.eq.s32.totalorder %s42_s20, 0  ;;  %p53_p2 = scmp.eq.s32.totalorder %s503_s15, 0 }
   0x8   : > { %p103_p3 = scmp.eq.s32.totalorder %s548_s16, 3  ;;  %p108_p4 = scmp.ne.s32.totalorder %s495_s13, %s491_s12 }
   0x9   : > { %s564_s21 = scalar_select %p43_p1, %s499_s14, %s45_s19  }
   0xa   : > { %p566_p5 = por %p53_p2, %p52_p0  ;;  %p570_p6 = por %p103_p3, %p52_p0 }
   0xb   : > { %p109_p7 = scmp.eq.s32.totalorder %s351_s17, 3  ;;  %p352_p8 = scmp.ge.s32.totalorder %s503_s15, 1 }
   0xc   : > { %s667_s23 = scalar_select %p570_p6, 1, 0 }
   0xd   : > { %p116_p9 = scmp.lt.s32.totalorder %s503_s15, 5  ;;  %p576_p10 = por %p109_p7, %p108_p4 }
   0xe   : > { %p386_p11 = scmp.eq.s32.totalorder %s548_s16, 0  ;;  %s129_s28 = sshll.u32 %s661_s0, 4  ;;  %s130_s28 = int_to_ptr.vmem [resolvable:$true] %s129_s28 }
   0xf   : > { %s668_s24 = scalar_select %p576_p10, 1, 0 }
  0x10   : > { %p581_p12 = pnand %p352_p8, %p116_p9  ;;  %s422_s29 = scalar_lea.vmem %s130_s28, 16 }
  0x11   : > { %p423_p1 = scmp.ne.s32.totalorder %s130_s28, %s422_s29  ;;  %p430_p7 = scmp.lt.s32.totalorder %s130_s28, %s130_s28 }
  0x12   : > { %p378_p13 = pneg %p581_p12  ;;  %p431_p8 = scmp.lt.s32.totalorder %s422_s29, %s422_s29 }
  0x14   : > { %p379_p0 = pnand %p386_p11, %p378_p13  ;;  %p432_p9 = por %p431_p8, %p430_p7 }
  0x16   : > { %p424_p2 = pneg %p379_p0 }
  0x18   : > { %p425_p3 = pnand %p424_p2, %p423_p1 }
  0x1a   : > { %p426_p4 = pneg %p425_p3 }
  0x1c   : > { %p433_p10 = pnand %p432_p9, %p426_p4 }
  0x1e   : > { %436 = shalt.err (!%p433_p10)
}
  0x1f   : > { %s505_s30 = smov [#allocation2]   ;;  %p354_p6 = scmp.ge.s32.totalorder %s503_s15, 4 }
  0x20   : > { %381 = dma.vmem_to_smem (!%p379_p0), %s130_s28, 16, %s505_s30, [#allocation4]  }
  0x21   : > { %139 = sbr.rel (%p354_p6) target bundleno = 48 (0x30), region = 24 }
  0x28   : > { %142 = sbr.rel (!%p566_p5) target bundleno = 48 (0x30), region = 28  ;;  %s144_s4 = sand.u32 (%p566_p5), 1, %s499_s14  }
  0x29   : > { %s356_s5 = sshll.u32 (%p566_p5), %s503_s15, 3  ;;  %s355_s6 = sshll.u32 (%p566_p5), %s144_s4, 5 }
  0x2a   : > { %s148_s9 = scalar_lea.vmem (%p566_p5), %s662_s1, %s356_s5  ;;  %s146_s10 = scalar_lea.vmem (%p566_p5), [#allocation5], %s355_s6 }
  0x2b   : > { %v182_v0 = vld [vmem:[%s148_s9] sm:$0xff] (%p566_p5) }
  0x2c   : > { %v184_v1 = vld [vmem:[%s148_s9 + $0x20] sm:$0xff] (%p566_p5)  ;;  %183 = vst [vmem:[%s146_s10] sm:$0xff] (%p566_p5), %v182_v0 }
  0x2d   : > { %v186_v2 = vld [vmem:[%s148_s9 + $0x40] sm:$0xff] (%p566_p5)  ;;  %185 = vst [vmem:[%s146_s10 + $0x8] sm:$0xff] (%p566_p5), %v184_v1 }
  0x2e   : > { %187 = vst [vmem:[%s146_s10 + $0x10] sm:$0xff] (%p566_p5), %v186_v2  ;;  %v188_v3 = vld [vmem:[%s148_s9 + $0x60] sm:$0xff] (%p566_p5) }
  0x2f   : > { %189 = vst [vmem:[%s146_s10 + $0x18] sm:$0xff] %v188_v3 }
  0x30 PF: > { %198 = sbr.rel (%p581_p12) target bundleno = 91 (0x5b), region = 66 }
  0x37   : > { %482 = dma.done.wait (%p386_p11), [#allocation4], 16  }
  0x38   : > { %484 = vsyncadd (%p386_p11), [#allocation4], 4294967280  ;;  %s607_s11 = sand.u32 1, %s495_s13  }
  0x39   : > { %s359_s17 = sshll.u32 %s607_s11, 5 }
  0x3a   : > { %s207_s19 = scalar_lea.vmem [#allocation5], %s359_s17 }
  0x3b   : > { %211 = sfence }
  0x3c   : > { %s230_s20 = sld [smem:[#allocation2]]  ;;  %s362_s22 = sld [smem:[#allocation2 + $0x1]]  ;;  %v229_v4 = vld [vmem:[%s207_s19] sm:$0xff]  ;;  %v361_v5 = vld [vmem:[%s207_s19 + $0x8] sm:$0xff]  ;;  %v363_v7 = vld [vmem:[%s207_s19 + $0x10] sm:$0xff] }
  0x3d   : > { %s364_s26 = sld [smem:[#allocation2 + $0x2]]  ;;  %s366_s27 = sld [smem:[#allocation2 + $0x3]]  ;;  %v365_v10 = vld [vmem:[%s207_s19 + $0x18] sm:$0xff]  ;;  %v367_v18 = vld [vmem:[%s663_s2] ss:$0 sm:$0xff] }
  0x3e   : > { %s360_s25 = sshll.u32 %s607_s11, 3  ;;  %s369_s5 = sshll.u32 %s548_s16, 7 }
  0x3f   : > { %s228_s30 = scalar_lea.vmem [#allocation6], %s360_s25  ;;  %s620_s8 = scalar_lea.hbm %s664_s3, %s369_s5 }
  0x40   : > { %s274_s4 = sshll.u32 %s228_s30, 4  ;;  %s261_s9 = scalar_lea.sflag [#allocation3], %s607_s11  ;;  %s615_s4 = int_to_ptr.vmem [resolvable:$true] %s274_s4 }
  0x41   : > { %s437_s10 = scalar_lea.vmem %s615_s4, 128  ;;  %p670_p6 = scmp.ne.s32.totalorder %s667_s23, 0 }
  0x42   : > { %v231_v6 = vstv %s230_s20  ;;  %v236_v9 = vstv %s362_s22  ;;  %p438_p5 = scmp.ne.s32.totalorder %s615_s4, %s437_s10  ;;  %s506_s16 = smov [#allocation6]  }
  0x43   : > { %v232_v8 = vmul.f32 %v231_v6, %v229_v4  ;;  %v237_v11 = vmul.f32 %v361_v5, %v236_v9  ;;  %v242_v12 = vstv %s364_s26  ;;  %v248_v13 = vstv %s366_s27  ;;  %s441_s17 = sshll.u32 %s506_s16, 4  ;;  %s442_s17 = int_to_ptr.vmem [resolvable:$false] %s441_s17 }
  0x44   : > { %v243_v14 = vmul.f32 %v363_v7, %v242_v12  ;;  %v249_v16 = vmul.f32 %v365_v10, %v248_v13  ;;  %p439_p10 = pnand %p438_p5, %p670_p6  ;;  %s443_s19 = scalar_lea.vmem %s442_s17, 256 }
  0x45   : > { %v238_v15 = vadd.f32 %v237_v11, %v232_v8  ;;  %p444_p12 = scmp.lt.s32.totalorder %s615_s4, %s442_s17  ;;  %p445_p13 = scmp.lt.s32.totalorder %s443_s19, %s437_s10 }
  0x46   : > { %p440_p11 = pneg %p439_p10 }
  0x47   : > { %v244_v17 = vadd.f32 %v243_v14, %v238_v15  ;;  %p446_p0 = por %p445_p13, %p444_p12 }
  0x49   : > { %v250_v19 = vadd.f32 %v249_v16, %v244_v17  ;;  %p447_p1 = pnand %p446_p0, %p440_p11 }
  0x4b   : > { %v258_v20 = vadd.f32 %v367_v18, %v250_v19 }
  0x4d   : > { %259 = vst [vmem:[%s228_s30] sm:$0xff] %v258_v20 }
  0x4e   : > { %450 = shalt.err (!%p447_p1)
}
  0x4f   : > { %s451_s11 = scalar_lea.hbm %s620_s8, 128  ;;  %s455_s26 = scalar_lea.hbm %s664_s3, 512 }
  0x50   : > { %p452_p2 = scmp.ne.s32.totalorder %s620_s8, %s451_s11  ;;  %p456_p7 = scmp.lt.u32.totalorder %s620_s8, %s664_s3 }
  0x51   : > { %p457_p8 = scmp.lt.u32.totalorder %s455_s26, %s451_s11  ;;  %p459_p5 = scmp.lt.u32.totalorder %s451_s11, %s620_s8 }
  0x52   : > { %p453_p3 = pnand %p452_p2, %p670_p6 }
  0x53   : > { %p458_p9 = por %p457_p8, %p456_p7 }
  0x54   : > { %p454_p4 = pneg %p453_p3 }
  0x55   : > { %p460_p10 = por %p459_p5, %p458_p9 }
  0x57   : > { %p461_p11 = pnand %p460_p10, %p454_p4 }
  0x59   : > { %464 = shalt.err (!%p461_p11)
}
  0x5a   : > { %376 = dma.vmem_to_hbm [thread:$0]  (%p670_p6), %s615_s4, 128, %s620_s8, %s261_s9  }
  0x5b PF: > { %p388_p12 = scmp.ge.s32.totalorder %s503_s15, 2  ;;  %s286_s28 = sand.u32 1, %s491_s12  }
  0x5c   : > { %p671_p13 = scmp.ne.s32.totalorder %s668_s24, 0  ;;  %s287_s29 = scalar_lea.sflag [#allocation3], %s286_s28 }
  0x5e   : > { %p383_p0 = pnand %p388_p12, %p671_p13 }
  0x60   : > { %486 = dma.done.wait (!%p383_p0), %s287_s29, 128  }
  0x61   : > { %488 = vsyncadd (!%p383_p0), %s287_s29, 4294967168  ;;  %p14_p1 = scmp.ge.s32.totalorder %s552_s18, 6   ;;  %s672_s12 = smov %s495_s13 }
  0x62   : > { %s673_s13 = smov %s499_s14  ;;  %s674_s14 = smov %s564_s21 }
  0x63   : > { %s675_s15 = smov %s552_s18  ;;  %16 = sbr.rel (!%p14_p1) target bundleno = 4 (0x4), region = 118 }
  0x6a   :  { %292 = vsyncpa [#allocation3], 1 }
  0x6b   :  { %294 = vsyncpa [#allocation3 + $0x1], 1 }
  0x6c   :  { %295 = vsyncpa [#allocation4], 1 }
  0x6d   :  { %297 = vsyncpa [#allocation4 + $0x1], 1 }

</bundles_post_ra>
